<compile_context>
chip_gen: v7x
topology: tpu7x:2x2x1
jax: 0.10.0
libtpu: 0.0.40
codegen_flags: <defaults>
</compile_context>

<pallas_src>
import jax
import jax.numpy as jnp
from jax.experimental import pallas as pl
from jax.experimental.pallas import tpu as pltpu

LANE = 128


def _round_up(n, m):
    return ((n + m - 1) // m) * m


def actor_mlp_kernel(x_ref,
                     w1_ref, b1_ref,
                     w2_ref, b2_ref,
                     w3_ref, b3_ref,
                     w4_ref, b4_ref,
                     mu_ref):
    """mu = 2 * tanh(Linear -> ReLU -> Linear -> ReLU -> Linear -> ReLU -> Linear)."""
    x = x_ref[...]

    h = jnp.dot(x, w1_ref[...], preferred_element_type=jnp.float32) + b1_ref[...]
    h = jnp.maximum(h, 0.0)

    h = jnp.dot(h, w2_ref[...], preferred_element_type=jnp.float32) + b2_ref[...]
    h = jnp.maximum(h, 0.0)

    h = jnp.dot(h, w3_ref[...], preferred_element_type=jnp.float32) + b3_ref[...]
    h = jnp.maximum(h, 0.0)

    out = jnp.dot(h, w4_ref[...], preferred_element_type=jnp.float32) + b4_ref[...]
    mu_ref[...] = 2.0 * jnp.tanh(out)


def actor_forward(x, params):
    """Returns (mu, std): parameters of the Normal the torch module would return.

    All matmul/activation compute runs in the Pallas kernel.  std is the learned
    (1, action_size) parameter, returned un-broadcast (Normal broadcasts lazily).
    """
    (w1, b1), (w2, b2), (w3, b3), (w4p, b4p), std = params
    B, in_size = x.shape
    hidden = w1.shape[1]
    a_pad = w4p.shape[1]          # lane-padded action dim (multiple of 128)
    action_size = std.shape[1]

    # Batch tile: multiple of 8 sublanes, capped so x/mu tiles + resident
    # weights comfortably fit VMEM (weights here are tiny; TM=512 ~ roofline).
    TM = min(512, _round_up(B, 8))
    grid = (pl.cdiv(B, TM),)

    # Weights / biases: constant block index -> fetched once, VMEM-resident.
    resident = lambda shape: pl.BlockSpec(shape, lambda i: (0, 0))

    flops = 2 * B * (in_size * hidden + 2 * hidden * hidden + hidden * a_pad)
    bytes_accessed = 4 * (B * in_size + B * a_pad
                          + in_size * hidden + 2 * hidden * hidden + hidden * a_pad
                          + 3 * hidden + a_pad)
    cost = pl.CostEstimate(flops=flops,
                           transcendentals=B * a_pad,
                           bytes_accessed=bytes_accessed)

    mu_padded = pl.pallas_call(
        actor_mlp_kernel,
        out_shape=jax.ShapeDtypeStruct((B, a_pad), jnp.float32),
        grid=grid,
        in_specs=[
            pl.BlockSpec((TM, in_size), lambda i: (i, 0)),   # streamed batch tile
            resident((in_size, hidden)), resident((1, hidden)),
            resident((hidden, hidden)), resident((1, hidden)),
            resident((hidden, hidden)), resident((1, hidden)),
            resident((hidden, a_pad)), resident((1, a_pad)),
        ],
        out_specs=pl.BlockSpec((TM, a_pad), lambda i: (i, 0)),  # lane-dense stores
        compiler_params=pltpu.CompilerParams(
            dimension_semantics=("parallel",)),   # shards batch across TCs on v7x
        cost_estimate=cost,
    )(x, w1, b1, w2, b2, w3, b3, w4p, b4p)

    mu = mu_padded[:, :action_size]
    return mu, std


def init_params(key, input_size, action_size, hidden_size):
    """Init mimicking nn.Linear default (uniform +-1/sqrt(fan_in)).

    Weights are stored pre-transposed to (in, out).  The last layer's weight and
    bias are zero-padded along the output dim to a multiple of 128 lanes so the
    kernel's output stores are lane-dense; padding is done once here, not per call.
    """
    def linear(k, fan_in, fan_out):
        kw, kb = jax.random.split(k)
        bound = 1.0 / jnp.sqrt(fan_in)
        w = jax.random.uniform(kw, (fan_in, fan_out), jnp.float32, -bound, bound)
        b = jax.random.uniform(kb, (1, fan_out), jnp.float32, -bound, bound)
        return w, b

    k1, k2, k3, k4 = jax.random.split(key, 4)
    l1 = linear(k1, input_size, hidden_size)
    l2 = linear(k2, hidden_size, hidden_size)
    l3 = linear(k3, hidden_size, hidden_size)
    w4, b4 = linear(k4, hidden_size, action_size)

    a_pad = _round_up(action_size, LANE)
    w4p = jnp.zeros((hidden_size, a_pad), jnp.float32).at[:, :action_size].set(w4)
    b4p = jnp.zeros((1, a_pad), jnp.float32).at[:, :action_size].set(b4)

    std = jnp.ones((1, action_size), jnp.float32)  # nn.Parameter(torch.ones(1, A))
    return (l1, l2, l3, (w4p, b4p), std)


if __name__ == "__main__":
    B, INPUT_SIZE, HIDDEN_SIZE, ACTION_SIZE = 8, 16, 32, 4

    key = jax.random.PRNGKey(0)
    k_params, k_x = jax.random.split(key)

    params = init_params(k_params, INPUT_SIZE, ACTION_SIZE, HIDDEN_SIZE)
    x = jax.random.normal(k_x, (B, INPUT_SIZE), jnp.float32)

    mu, std = actor_forward(x, params)
    jax.block_until_ready((mu, std))

    # Reference check in plain JAX (same math) for sanity.
    (w1, b1), (w2, b2), (w3, b3), (w4p, b4p), std_p = params
    w4 = w4p[:, :ACTION_SIZE]
    b4 = b4p[:, :ACTION_SIZE]
    h = jnp.maximum(x @ w1 + b1, 0.0)
    h = jnp.maximum(h @ w2 + b2, 0.0)
    h = jnp.maximum(h @ w3 + b3, 0.0)
    mu_ref = 2.0 * jnp.tanh(h @ w4 + b4)
    assert jnp.allclose(mu, mu_ref, atol=1e-5), "mismatch vs reference"
    assert mu.shape == (B, ACTION_SIZE) and std.shape == (1, ACTION_SIZE)

    print("KERNEL_OK")
</pallas_src>

<mosaic_0001>
module attributes {stable_mosaic.version = 11 : i64} {
  func.func @actor_mlp_kernel(%arg0: i32, %arg1: memref<8x16xf32, #tpu.memory_space<vmem>>, %arg2: memref<16x32xf32, #tpu.memory_space<vmem>>, %arg3: memref<1x32xf32, #tpu.memory_space<vmem>>, %arg4: memref<32x32xf32, #tpu.memory_space<vmem>>, %arg5: memref<1x32xf32, #tpu.memory_space<vmem>>, %arg6: memref<32x32xf32, #tpu.memory_space<vmem>>, %arg7: memref<1x32xf32, #tpu.memory_space<vmem>>, %arg8: memref<32x128xf32, #tpu.memory_space<vmem>>, %arg9: memref<1x128xf32, #tpu.memory_space<vmem>>, %arg10: memref<8x128xf32, #tpu.memory_space<vmem>>) attributes {dimension_semantics = [#tpu.dimension_semantics<parallel>], iteration_bounds = array<i64: 1>, scalar_prefetch = 0 : i64, scratch_operands = 0 : i64, tpu.core_type = #tpu.core_type<tc>, window_params = [{transform_indices = @transform_0, window_bounds = array<i64: 8, 16>}, {pipeline_mode = #tpu.pipeline_mode<synchronous>, transform_indices = @transform_1, window_bounds = array<i64: 16, 32>}, {pipeline_mode = #tpu.pipeline_mode<synchronous>, transform_indices = @transform_2, window_bounds = array<i64: 1, 32>}, {pipeline_mode = #tpu.pipeline_mode<synchronous>, transform_indices = @transform_3, window_bounds = array<i64: 32, 32>}, {pipeline_mode = #tpu.pipeline_mode<synchronous>, transform_indices = @transform_4, window_bounds = array<i64: 1, 32>}, {pipeline_mode = #tpu.pipeline_mode<synchronous>, transform_indices = @transform_5, window_bounds = array<i64: 32, 32>}, {pipeline_mode = #tpu.pipeline_mode<synchronous>, transform_indices = @transform_6, window_bounds = array<i64: 1, 32>}, {pipeline_mode = #tpu.pipeline_mode<synchronous>, transform_indices = @transform_7, window_bounds = array<i64: 32, 128>}, {pipeline_mode = #tpu.pipeline_mode<synchronous>, transform_indices = @transform_8, window_bounds = array<i64: 1, 128>}, {transform_indices = @transform_9, window_bounds = array<i64: 8, 128>}]} {
    %c0 = arith.constant 0 : index
    %c0_0 = arith.constant 0 : index
    %0 = vector.load %arg1[%c0, %c0_0] : memref<8x16xf32, #tpu.memory_space<vmem>>, vector<8x16xf32>
    %c0_1 = arith.constant 0 : index
    %c0_2 = arith.constant 0 : index
    %1 = vector.load %arg2[%c0_1, %c0_2] : memref<16x32xf32, #tpu.memory_space<vmem>>, vector<16x32xf32>
    %cst = arith.constant dense<0.000000e+00> : vector<8x32xf32>
    %2 = tpu.matmul %0, %1, %cst {dimension_numbers = #tpu.dot_dimension_numbers<[1], [0], [0], [1], [0, 0, 1, 1], [], []>} : vector<8x16xf32>, vector<16x32xf32>, vector<8x32xf32> -> vector<8x32xf32>
    %c0_3 = arith.constant 0 : index
    %c0_4 = arith.constant 0 : index
    %3 = vector.load %arg3[%c0_3, %c0_4] : memref<1x32xf32, #tpu.memory_space<vmem>>, vector<1x32xf32>
    %4 = vector.broadcast %3 : vector<1x32xf32> to vector<8x32xf32>
    %5 = arith.addf %2, %4 : vector<8x32xf32>
    %cst_5 = arith.constant 0.000000e+00 : f32
    %6 = vector.broadcast %cst_5 : f32 to vector<8x32xf32>
    %7 = arith.maximumf %5, %6 : vector<8x32xf32>
    %c0_6 = arith.constant 0 : index
    %c0_7 = arith.constant 0 : index
    %8 = vector.load %arg4[%c0_6, %c0_7] : memref<32x32xf32, #tpu.memory_space<vmem>>, vector<32x32xf32>
    %cst_8 = arith.constant dense<0.000000e+00> : vector<8x32xf32>
    %9 = tpu.matmul %7, %8, %cst_8 {dimension_numbers = #tpu.dot_dimension_numbers<[1], [0], [0], [1], [0, 0, 1, 1], [], []>} : vector<8x32xf32>, vector<32x32xf32>, vector<8x32xf32> -> vector<8x32xf32>
    %c0_9 = arith.constant 0 : index
    %c0_10 = arith.constant 0 : index
    %10 = vector.load %arg5[%c0_9, %c0_10] : memref<1x32xf32, #tpu.memory_space<vmem>>, vector<1x32xf32>
    %11 = vector.broadcast %10 : vector<1x32xf32> to vector<8x32xf32>
    %12 = arith.addf %9, %11 : vector<8x32xf32>
    %cst_11 = arith.constant 0.000000e+00 : f32
    %13 = vector.broadcast %cst_11 : f32 to vector<8x32xf32>
    %14 = arith.maximumf %12, %13 : vector<8x32xf32>
    %c0_12 = arith.constant 0 : index
    %c0_13 = arith.constant 0 : index
    %15 = vector.load %arg6[%c0_12, %c0_13] : memref<32x32xf32, #tpu.memory_space<vmem>>, vector<32x32xf32>
    %cst_14 = arith.constant dense<0.000000e+00> : vector<8x32xf32>
    %16 = tpu.matmul %14, %15, %cst_14 {dimension_numbers = #tpu.dot_dimension_numbers<[1], [0], [0], [1], [0, 0, 1, 1], [], []>} : vector<8x32xf32>, vector<32x32xf32>, vector<8x32xf32> -> vector<8x32xf32>
    %c0_15 = arith.constant 0 : index
    %c0_16 = arith.constant 0 : index
    %17 = vector.load %arg7[%c0_15, %c0_16] : memref<1x32xf32, #tpu.memory_space<vmem>>, vector<1x32xf32>
    %18 = vector.broadcast %17 : vector<1x32xf32> to vector<8x32xf32>
    %19 = arith.addf %16, %18 : vector<8x32xf32>
    %cst_17 = arith.constant 0.000000e+00 : f32
    %20 = vector.broadcast %cst_17 : f32 to vector<8x32xf32>
    %21 = arith.maximumf %19, %20 : vector<8x32xf32>
    %c0_18 = arith.constant 0 : index
    %c0_19 = arith.constant 0 : index
    %22 = vector.load %arg8[%c0_18, %c0_19] : memref<32x128xf32, #tpu.memory_space<vmem>>, vector<32x128xf32>
    %cst_20 = arith.constant dense<0.000000e+00> : vector<8x128xf32>
    %23 = tpu.matmul %21, %22, %cst_20 {dimension_numbers = #tpu.dot_dimension_numbers<[1], [0], [0], [1], [0, 0, 1, 1], [], []>} : vector<8x32xf32>, vector<32x128xf32>, vector<8x128xf32> -> vector<8x128xf32>
    %c0_21 = arith.constant 0 : index
    %c0_22 = arith.constant 0 : index
    %24 = vector.load %arg9[%c0_21, %c0_22] : memref<1x128xf32, #tpu.memory_space<vmem>>, vector<1x128xf32>
    %25 = vector.broadcast %24 : vector<1x128xf32> to vector<8x128xf32>
    %26 = arith.addf %23, %25 : vector<8x128xf32>
    %27 = math.tanh %26 : vector<8x128xf32>
    %cst_23 = arith.constant 2.000000e+00 : f32
    %28 = vector.broadcast %cst_23 : f32 to vector<8x128xf32>
    %29 = arith.mulf %28, %27 : vector<8x128xf32>
    %c0_24 = arith.constant 0 : index
    %c0_25 = arith.constant 0 : index
    %30 = vector.load %arg10[%c0_24, %c0_25] : memref<8x128xf32, #tpu.memory_space<vmem>>, vector<8x128xf32>
    tpu.vector_store %arg10[%c0_24, %c0_25], %29 {strides = array<i32>} : memref<8x128xf32, #tpu.memory_space<vmem>>, vector<8x128xf32>,
    return
  }
  func.func @transform_0(%arg0: i32) -> (i32, i32) {
    %c0_i32 = arith.constant 0 : i32
    %c0_i32_0 = arith.constant 0 : i32
    return %arg0, %c0_i32 : i32, i32
  }
  func.func @transform_1(%arg0: i32) -> (i32, i32) {
    %c0_i32 = arith.constant 0 : i32
    %c0_i32_0 = arith.constant 0 : i32
    %c0_i32_1 = arith.constant 0 : i32
    return %c0_i32, %c0_i32_0 : i32, i32
  }
  func.func @transform_2(%arg0: i32) -> (i32, i32) {
    %c0_i32 = arith.constant 0 : i32
    %c0_i32_0 = arith.constant 0 : i32
    %c0_i32_1 = arith.constant 0 : i32
    return %c0_i32, %c0_i32_0 : i32, i32
  }
  func.func @transform_3(%arg0: i32) -> (i32, i32) {
    %c0_i32 = arith.constant 0 : i32
    %c0_i32_0 = arith.constant 0 : i32
    %c0_i32_1 = arith.constant 0 : i32
    return %c0_i32, %c0_i32_0 : i32, i32
  }
  func.func @transform_4(%arg0: i32) -> (i32, i32) {
    %c0_i32 = arith.constant 0 : i32
    %c0_i32_0 = arith.constant 0 : i32
    %c0_i32_1 = arith.constant 0 : i32
    return %c0_i32, %c0_i32_0 : i32, i32
  }
  func.func @transform_5(%arg0: i32) -> (i32, i32) {
    %c0_i32 = arith.constant 0 : i32
    %c0_i32_0 = arith.constant 0 : i32
    %c0_i32_1 = arith.constant 0 : i32
    return %c0_i32, %c0_i32_0 : i32, i32
  }
  func.func @transform_6(%arg0: i32) -> (i32, i32) {
    %c0_i32 = arith.constant 0 : i32
    %c0_i32_0 = arith.constant 0 : i32
    %c0_i32_1 = arith.constant 0 : i32
    return %c0_i32, %c0_i32_0 : i32, i32
  }
  func.func @transform_7(%arg0: i32) -> (i32, i32) {
    %c0_i32 = arith.constant 0 : i32
    %c0_i32_0 = arith.constant 0 : i32
    %c0_i32_1 = arith.constant 0 : i32
    return %c0_i32, %c0_i32_0 : i32, i32
  }
  func.func @transform_8(%arg0: i32) -> (i32, i32) {
    %c0_i32 = arith.constant 0 : i32
    %c0_i32_0 = arith.constant 0 : i32
    %c0_i32_1 = arith.constant 0 : i32
    return %c0_i32, %c0_i32_0 : i32, i32
  }
  func.func @transform_9(%arg0: i32) -> (i32, i32) {
    %c0_i32 = arith.constant 0 : i32
    %c0_i32_0 = arith.constant 0 : i32
    return %arg0, %c0_i32 : i32, i32
  }
}

</mosaic_0001>

<bundles_post_ra>
// kernel: tpu_custom_call.1
= control target key start
LH: loop header
LB: loop body
LE: loop exit
PB: predicated region body
PF: predicated region fallthrough
CT: control target
= control target key end

     0   :  { %14 = vsyncpa [#allocation3], 0  ;;  %s863_s0 = inlined_call_operand.hbm [shape: f32[8,16], index: 0, kind: input, shape index: {}]   ;;  %s864_s1 = inlined_call_operand.hbm [shape: f32[16,32], index: 1, kind: input, shape index: {}]   ;;  %s865_s2 = inlined_call_operand.vmem [shape: f32[1,32], index: 2, kind: input, shape index: {}]   ;;  %s866_s3 = inlined_call_operand.hbm [shape: f32[32,32], index: 3, kind: input, shape index: {}]   ;;  %s867_s4 = inlined_call_operand.vmem [shape: f32[1,32], index: 4, kind: input, shape index: {}]   ;;  %s868_s5 = inlined_call_operand.hbm [shape: f32[32,32], index: 5, kind: input, shape index: {}]   ;;  %s869_s6 = inlined_call_operand.vmem [shape: f32[1,32], index: 6, kind: input, shape index: {}]   ;;  %s870_s7 = inlined_call_operand.hbm [shape: f32[32,128], index: 7, kind: input, shape index: {}]   ;;  %s871_s8 = inlined_call_operand.vmem [shape: f32[1,128], index: 8, kind: input, shape index: {}]   ;;  %s872_s9 = inlined_call_operand.hbm [shape: f32[8,128], index: 9, kind: output, shape index: {}]  }
   0x1   :  { %15 = vsyncpa [#allocation6], 0 }
   0x2   :  { %16 = vsyncpa [#allocation9], 0 }
   0x3   :  { %17 = vsyncpa [#allocation4], 0  ;;  %s699_s30 = smov [#allocation5]   ;;  %s559_s13 = scalar_lea.hbm %s864_s1, 256 }
   0x4   :  { %s33_s10 = sshll.u32 %s699_s30, 4  ;;  %p560_p0 = scmp.ne.s32.totalorder %s864_s1, %s559_s13  ;;  %s34_s10 = int_to_ptr.vmem [resolvable:$true] %s33_s10 }
   0x5   :  { %p563_p1 = scmp.lt.u32.totalorder %s559_s13, %s864_s1 }
   0x7   :  { %p565_p2 = pnand %p563_p1, %p560_p0 }
   0x9   :  { %568 = shalt.err (!%p565_p2)
}
   0xa   :  { %s569_s18 = scalar_lea.vmem %s34_s10, 256  ;;  %p574_p4 = scmp.lt.s32.totalorder %s34_s10, %s34_s10 }
   0xb   :  { %p570_p3 = scmp.ne.s32.totalorder %s34_s10, %s569_s18  ;;  %p575_p5 = scmp.lt.s32.totalorder %s569_s18, %s569_s18 }
   0xd   :  { %p576_p6 = por %p575_p5, %p574_p4 }
   0xf   :  { %p577_p7 = pnand %p576_p6, %p570_p3 }
  0x11   :  { %580 = shalt.err (!%p577_p7)
}
  0x12   :  { %s700_s19 = smov 128   ;;  %s701_s20 = smov 8  }
  0x13   :  { %39 = dma.hbm_to_vmem [thread:$0]  %s864_s1, 256, %s34_s10, [#allocation6], %s700_s19, %s700_s19, %s701_s20  }
  0x14   :  { %s702_s23 = smov [#allocation8]   ;;  %s703_s25 = smov [#allocation2]  }
  0x15   :  { %s61_s24 = sshll.u32 %s702_s23, 4  ;;  %s24_s26 = sshll.u32 %s703_s25, 4  ;;  %s62_s24 = int_to_ptr.vmem [resolvable:$true] %s61_s24  ;;  %s25_s26 = int_to_ptr.vmem [resolvable:$true] %s24_s26 }
  0x16   :  { %s581_s29 = scalar_lea.hbm %s868_s5, 512 }
  0x17   :  { %p582_p8 = scmp.ne.s32.totalorder %s868_s5, %s581_s29  ;;  %p585_p9 = scmp.lt.u32.totalorder %s581_s29, %s868_s5 }
  0x19   :  { %p587_p10 = pnand %p585_p9, %p582_p8 }
  0x1b   :  { %590 = shalt.err (!%p587_p10)
}
  0x1c   :  { %s591_s1 = scalar_lea.vmem %s62_s24, 512  ;;  %p596_p12 = scmp.lt.s32.totalorder %s62_s24, %s62_s24 }
  0x1d   :  { %p592_p11 = scmp.ne.s32.totalorder %s62_s24, %s591_s1  ;;  %p597_p13 = scmp.lt.s32.totalorder %s591_s1, %s591_s1 }
  0x1f   :  { %p598_p0 = por %p597_p13, %p596_p12 }
  0x21   :  { %p599_p1 = pnand %p598_p0, %p592_p11 }
  0x23   :  { %602 = shalt.err (!%p599_p1)
}
  0x24   :  { %67 = dma.hbm_to_vmem [thread:$0]  %s868_s5, 512, %s62_s24, [#allocation9], %s700_s19, %s700_s19, %s701_s20  }
  0x25   :  { %s603_s17 = scalar_lea.hbm %s863_s0, 128 }
  0x26   :  { %p604_p2 = scmp.ne.s32.totalorder %s863_s0, %s603_s17  ;;  %p607_p3 = scmp.lt.u32.totalorder %s603_s17, %s863_s0 }
  0x28   :  { %p609_p4 = pnand %p607_p3, %p604_p2 }
  0x2a   :  { %612 = shalt.err (!%p609_p4)
}
  0x2b   :  { %s613_s25 = scalar_lea.vmem %s25_s26, 128  ;;  %p618_p6 = scmp.lt.s32.totalorder %s25_s26, %s25_s26 }
  0x2c   :  { %p614_p5 = scmp.ne.s32.totalorder %s25_s26, %s613_s25  ;;  %p619_p7 = scmp.lt.s32.totalorder %s613_s25, %s613_s25 }
  0x2e   :  { %p620_p8 = por %p619_p7, %p618_p6 }
  0x30   :  { %p621_p9 = pnand %p620_p8, %p614_p5 }
  0x32   :  { %624 = shalt.err (!%p621_p9)
}
  0x33   :  { %27 = dma.hbm_to_vmem [thread:$0]  %s863_s0, 128, %s25_s26, [#allocation3]  }
  0x34   :  { %s704_s27 = smov [#allocation7]   ;;  %s705_s29 = smov [#allocation10]  }
  0x35   :  { %s47_s28 = sshll.u32 %s704_s27, 4  ;;  %s75_s30 = sshll.u32 %s705_s29, 4  ;;  %s48_s28 = int_to_ptr.vmem [resolvable:$true] %s47_s28  ;;  %s76_s30 = int_to_ptr.vmem [resolvable:$true] %s75_s30 }
  0x36   :  { %s625_s13 = scalar_lea.hbm %s866_s3, 512 }
  0x37   :  { %p626_p10 = scmp.ne.s32.totalorder %s866_s3, %s625_s13  ;;  %p629_p11 = scmp.lt.u32.totalorder %s625_s13, %s866_s3 }
  0x39   :  { %p631_p12 = pnand %p629_p11, %p626_p10 }
  0x3b   :  { %634 = shalt.err (!%p631_p12)
}
  0x3c   :  { %s635_s0 = scalar_lea.vmem %s48_s28, 512  ;;  %p640_p0 = scmp.lt.s32.totalorder %s48_s28, %s48_s28 }
  0x3d   :  { %p636_p13 = scmp.ne.s32.totalorder %s48_s28, %s635_s0  ;;  %p641_p1 = scmp.lt.s32.totalorder %s635_s0, %s635_s0 }
  0x3f   :  { %p642_p2 = por %p641_p1, %p640_p0 }
  0x41   :  { %p643_p3 = pnand %p642_p2, %p636_p13 }
  0x43   :  { %646 = shalt.err (!%p643_p3)
}
  0x44   :  { %53 = dma.hbm_to_vmem [thread:$0]  %s866_s3, 512, %s48_s28, [#allocation6], %s700_s19, %s700_s19, %s701_s20  }
  0x45   :  { %s647_s21 = scalar_lea.hbm %s870_s7, 512 }
  0x46   :  { %p648_p4 = scmp.ne.s32.totalorder %s870_s7, %s647_s21  ;;  %p651_p5 = scmp.lt.u32.totalorder %s647_s21, %s870_s7 }
  0x48   :  { %p653_p6 = pnand %p651_p5, %p648_p4 }
  0x4a   :  { %656 = shalt.err (!%p653_p6)
}
  0x4b   :  { %s657_s24 = scalar_lea.vmem %s76_s30, 512  ;;  %p662_p8 = scmp.lt.s32.totalorder %s76_s30, %s76_s30 }
  0x4c   :  { %p658_p7 = scmp.ne.s32.totalorder %s76_s30, %s657_s24  ;;  %p663_p9 = scmp.lt.s32.totalorder %s657_s24, %s657_s24 }
  0x4e   :  { %p664_p10 = por %p663_p9, %p662_p8 }
  0x50   :  { %p665_p11 = pnand %p664_p10, %p658_p7 }
  0x52   :  { %668 = shalt.err (!%p665_p11)
}
  0x53   :  { %81 = dma.hbm_to_vmem [thread:$0]  %s870_s7, 512, %s76_s30, [#allocation9], %s700_s19, %s700_s19, %s701_s20  }
  0x54   :  { %691 = dma.done.wait [#allocation3], 128  }
  0x55   :  { %692 = vsyncadd [#allocation3], 4294967168 }
  0x56   :  { %693 = dma.done.wait [#allocation6], 768  }
  0x57   :  { %694 = vsyncadd [#allocation6], 4294966528 }
  0x58   :  { %695 = dma.done.wait [#allocation9], 1024  }
  0x59   :  { %696 = vsyncadd [#allocation9], 4294966272  ;;  %v706_v0 = vmov 0.0|0.0   ;;  %vm707_vm0 = vmmov 0   ;;  %v708_v1 = vmov 0.0   ;;  %v100_v2 = vld [vmem:[#allocation5] sm:$0xff] }
  0x5a   :  { %525 = vmatprep.subr.bf16.mxu0 %v706_v0  ;;  %489 = vmatprep.mubr.msk.f32.mxu0 %vm707_vm0, %v708_v1  ;;  %v101_v3 = vld [vmem:[#allocation5 + $0x8] sm:$0xff]  ;;  %v184_v5 = vld [vmem:[#allocation7] sm:$0xff]  ;;  %v185_v6 = vld [vmem:[#allocation7 + $0x8] sm:$0xff]  ;;  %vm109_vm1 = vcmask 130048   ;;  %vm195_vm2 = vcmask 261120   ;;  %s709_s11 = smov [#allocation11]  }
  0x5b   :  { %528 = vmatprep.subr.bf16.mxu1 %v706_v0  ;;  %500 = vmatprep.mubr.msk.f32.mxu1 %vm707_vm0, %v708_v1  ;;  %v526_v4 = vpack.c.bf16 %v101_v3, %v100_v2  ;;  %v529_v7 = vpack.c.bf16 %v185_v6, %v184_v5  ;;  %v99_v8 = vld [vmem:[#allocation2] sm:$0xff]  ;;  %v186_v9 = vld [vmem:[#allocation7 + $0x10] sm:$0xff]  ;;  %v187_v10 = vld [vmem:[#allocation7 + $0x18] sm:$0xff]  ;;  %s448_s12 = sshll.u32 %s709_s11, 4  ;;  %s449_s12 = int_to_ptr.vmem [resolvable:$true] %s448_s12 }
  0x5c   :  { %v532_v11 = vpack.c.bf16 %v187_v10, %v186_v9  ;;  %v270_v12 = vld [vmem:[#allocation8] sm:$0xff]  ;;  %v271_v13 = vld [vmem:[#allocation8 + $0x8] sm:$0xff]  ;;  %v272_v20 = vld [vmem:[#allocation8 + $0x10] sm:$0xff]  ;;  %p674_p13 = scmp.lt.s32.totalorder %s449_s12, %s449_s12 }
  0x5d   :  { %527 = vmatpush3.bf16.msra.mxu0 %v526_v4  ;;  %530 = vmatpush3.bf16.msra.mxu1 %v529_v7  ;;  %v535_v14 = vpack.c.bf16 %v271_v13, %v270_v12  ;;  %v459_v15 = vld [vmem:[%s865_s2] ss:$0 sm:$0xff]  ;;  %v273_v21 = vld [vmem:[#allocation8 + $0x18] sm:$0xff]  ;;  %v355_v23 = vld [vmem:[#allocation10] sm:$0xff] }
  0x5e   :  { %534 = vmatprep.subr.bf16.mxu0 %v706_v0  ;;  %531 = vmatprep.subr.bf16.mxu1 %v706_v0  ;;  %v538_v22 = vpack.c.bf16 %v273_v21, %v272_v20  ;;  %v356_v24 = vld [vmem:[#allocation10 + $0x8] sm:$0xff]  ;;  %v357_v31 = vld [vmem:[#allocation10 + $0x10] sm:$0xff]  ;;  %v358_v32 = vld [vmem:[#allocation10 + $0x18] sm:$0xff] }
  0x5f   :  { %v541_v25 = vpack.c.bf16 %v356_v24, %v355_v23  ;;  %v461_v26 = vld [vmem:[%s867_s4] ss:$0 sm:$0xff]  ;;  %v544_v33 = vpack.c.bf16 %v358_v32, %v357_v31 }
  0x60   :  { %490 = vmatmul.mubr.msk.f32.vlgmr.msra.gmra.mrb[0].mxu0 %vm109_vm1, %v99_v8  ;;  %v463_v34 = vld [vmem:[%s869_s6] ss:$0 sm:$0xff]  ;;  %s669_s6 = scalar_lea.vmem %s449_s12, 128 }
  0x61   :  { %511 = vmatprep.mubr.msk.f32.mxu0 %vm707_vm0, %v708_v1  ;;  %533 = vmatpush3.bf16.msra.mxu1 %v532_v11  ;;  %v465_v39 = vld [vmem:[%s871_s8] ss:$0 sm:$0xff]  ;;  %p670_p12 = scmp.ne.s32.totalorder %s449_s12, %s669_s6  ;;  %p675_p0 = scmp.lt.s32.totalorder %s669_s6, %s669_s6 }
  0x62   :  { %540 = vmatprep.subr.bf16.mxu1 %v706_v0  ;;  %536 = vmatpush3.bf16.msra.mxu0 %v535_v14 }
  0x63   :  { %537 = vmatprep.subr.bf16.mxu0 %v706_v0  ;;  %p676_p1 = por %p675_p0, %p674_p13 }
  0x65   :  { %p677_p2 = pnand %p676_p1, %p670_p12 }
  0x66   :  { %539 = vmatpush3.bf16.msra.mxu0 %v538_v22 }
 0x133   :  { %v179_v16 = vpop.f32.mrb[0].mxu0 }
 0x134   :  { %v180_v17 = vadd.f32 %v459_v15, %v179_v16  ;;  %v491_v18 = vpop.f32.mrb[1].mxu0 }
 0x136   :  { %v183_v19 = vmax.f32 %v180_v17, 0.0 }
 0x138   :  { %501 = vmatmul.mubr.msk.f32.vlgmr.msra.gmra.mrb[0].mxu1 %vm195_vm2, %v183_v19 }
 0x139   :  { %522 = vmatprep.mubr.msk.f32.mxu1 %vm707_vm0, %v708_v1  ;;  %542 = vmatpush3.bf16.msra.mxu1 %v541_v25 }
 0x13a   :  { %543 = vmatprep.subr.bf16.mxu1 %v706_v0 }
 0x13d   :  { %545 = vmatpush3.bf16.msra.mxu1 %v544_v33 }
 0x20b   :  { %v265_v27 = vpop.f32.mrb[0].mxu1 }
 0x20c   :  { %v266_v28 = vadd.f32 %v461_v26, %v265_v27  ;;  %v502_v29 = vpop.f32.mrb[1].mxu1 }
 0x20e   :  { %v269_v30 = vmax.f32 %v266_v28, 0.0 }
 0x210   :  { %512 = vmatmul.mubr.msk.f32.vlgmr.msra.gmra.mrb[2].mxu0 %vm195_vm2, %v269_v30 }
 0x2e3   :  { %v350_v35 = vpop.f32.mrb[2].mxu0 }
 0x2e4   :  { %v351_v36 = vadd.f32 %v463_v34, %v350_v35  ;;  %v513_v37 = vpop.f32.mrb[3].mxu0 }
 0x2e6   :  { %v354_v38 = vmax.f32 %v351_v36, 0.0 }
 0x2e8   :  { %523 = vmatmul.mubr.msk.f32.vlgmr.msra.gmra.mrb[2].mxu1 %vm195_vm2, %v354_v38 }
 0x3bb   :  { %v435_v40 = vpop.f32.mrb[2].mxu1 }
 0x3bc   :  { %v436_v41 = vadd.f32 %v465_v39, %v435_v40  ;;  %v524_v42 = vpop.f32.mrb[3].mxu1 }
 0x3be   :  { %557 = vtanh.f32 %v436_v41 }
 0x3c8   :  { %v558_v43 = vpop.eup %557 }
 0x3c9   :  { %v440_v44 = vmul.f32 2.0, %v558_v43 }
 0x3cb   :  { %441 = vst [vmem:[#allocation11] sm:$0xff] %v440_v44 }
 0x3cc   :  { %680 = shalt.err (!%p677_p2)
}
 0x3cd   :  { %s681_s8 = scalar_lea.hbm %s872_s9, 128 }
 0x3ce   :  { %p682_p3 = scmp.ne.s32.totalorder %s872_s9, %s681_s8  ;;  %p685_p4 = scmp.lt.u32.totalorder %s681_s8, %s872_s9 }
 0x3d0   :  { %p687_p5 = pnand %p685_p4, %p682_p3 }
 0x3d2   :  { %690 = shalt.err (!%p687_p5)
}
 0x3d3   :  { %451 = dma.vmem_to_hbm [thread:$0]  %s449_s12, 128, %s872_s9, [#allocation4]  }
 0x3d4   :  { %697 = dma.done.wait [#allocation4], 128  }
 0x3d5   :  { %698 = vsyncadd [#allocation4], 4294967168 }
 0x3d6   :  { %455 = vsyncpa [#allocation3], 1 }
 0x3d7   :  { %456 = vsyncpa [#allocation6], 1 }
 0x3d8   :  { %457 = vsyncpa [#allocation9], 1 }
 0x3d9   :  { %458 = vsyncpa [#allocation4], 1 }

</bundles_post_ra>
